<compile_context>
chip_gen: v5e
topology: v5e:2x2
jax: 0.10.0
libtpu: 0.0.40
codegen_flags: <defaults>
</compile_context>

<pallas_src>
import jax
import jax.numpy as jnp
from jax.experimental import pallas as pl
from jax.experimental.pallas import tpu as pltpu


def _imputer_kernel(adj_ref, x_ref,
                    w_enc_ref, b_enc_ref,
                    w_mu_ref,
                    w_proj_ref, b_zr_ref,
                    w_dec_ref, b_dec_ref,
                    out_ref):
    n = adj_ref.shape[0]
    adj = adj_ref[...]

    # --- GCN normalization fused into the kernel (VPU / XLU / EUP work) ---
    # 0/1 mask with the diagonal forced to exactly 1 (add_remaining_self_loops).
    row = jax.lax.broadcasted_iota(jnp.int32, (n, n), 0)
    col = jax.lax.broadcasted_iota(jnp.int32, (n, n), 1)
    a = jnp.where(row == col, 1.0, (adj != 0.0).astype(jnp.float32))
    # Symmetric normalization A_hat = D_r^-1/2 A D_c^-1/2 (row / column degree sums
    # avoid an in-kernel transpose; identical for the symmetric adjacency used here).
    deg_r = jnp.sum(a, axis=1, keepdims=True)                      # [N, 1]
    deg_c = jnp.sum(a, axis=0, keepdims=True)                      # [1, N]
    d_r = jax.lax.rsqrt(jnp.maximum(deg_r, 1e-12))
    d_c = jax.lax.rsqrt(jnp.maximum(deg_c, 1e-12))
    a_hat = a * d_r * d_c

    x = x_ref[...]

    # Encoder (reassociated): pos_z = ReLU( A_hat @ (X @ W_enc) + b_enc )
    xw = jnp.dot(x, w_enc_ref[...], preferred_element_type=jnp.float32)
    pos_z = jnp.maximum(
        jnp.dot(a_hat, xw, preferred_element_type=jnp.float32) + b_enc_ref[...], 0.0)

    # z + r with the gather folded into W_proj_full and b_mu + b_proj pre-folded.
    zr = (jnp.dot(pos_z, w_mu_ref[...], preferred_element_type=jnp.float32)
          + jnp.dot(x, w_proj_ref[...], preferred_element_type=jnp.float32)
          + b_zr_ref[...])

    # Decoder: decoded = (z + r) @ W_dec + b_dec   (lane-dense [N, 128*k] store)
    out_ref[...] = (jnp.dot(zr, w_dec_ref[...], preferred_element_type=jnp.float32)
                    + b_dec_ref[...])


def _round_up(x, m):
    return ((x + m - 1) // m) * m


def _pad_to(a, shape):
    out = jnp.zeros(shape, jnp.float32)
    return out.at[tuple(slice(0, s) for s in a.shape)].set(a)


def prepare_params(params, indices, feat_dim, lane=128):
    """One-time (outside the hot path) parameter preparation:
    scatter the projector to full feature width, fold biases, pad lane dims to 128."""
    (w_enc, b_enc, w_mu, b_mu, w_proj, b_proj, w_dec, b_dec) = params
    hidden, latent, out_dim = w_enc.shape[1], w_mu.shape[1], w_dec.shape[1]
    hp, lp, op = _round_up(hidden, lane), _round_up(latent, lane), _round_up(out_dim, lane)

    # Fold the column gather X[:, indices] @ W_proj into X @ W_proj_full.
    w_proj_full = jnp.zeros((feat_dim, latent), jnp.float32).at[indices].set(w_proj)

    kparams = (
        _pad_to(w_enc, (feat_dim, hp)),
        _pad_to(b_enc, (1, hp)),
        _pad_to(w_mu, (hp, lp)),
        _pad_to(w_proj_full, (feat_dim, lp)),
        _pad_to(b_mu + b_proj, (1, lp)),      # single fused bias for z + r
        _pad_to(w_dec, (lp, op)),
        _pad_to(b_dec, (1, op)),
    )
    return kparams, out_dim


def protein_imputer_forward(X, adj, kparams, out_dim):
    """One fused Pallas call; only a trivial lane-slice of the padded output remains outside."""
    N, _ = X.shape
    o_pad = kparams[-2].shape[1]

    inputs = (adj, X) + kparams
    in_specs = [pl.BlockSpec(memory_space=pltpu.MemorySpace.VMEM) for _ in inputs]

    out_padded = pl.pallas_call(
        _imputer_kernel,
        out_shape=jax.ShapeDtypeStruct((N, o_pad), jnp.float32),
        in_specs=in_specs,
        out_specs=pl.BlockSpec(memory_space=pltpu.MemorySpace.VMEM),
    )(*inputs)
    return out_padded[:, :out_dim]


def init_params(key, feat_dim, hidden_dim, latent_dim, n_idx, out_dim):
    ks = jax.random.split(key, 8)
    scale = 0.1
    w_enc = scale * jax.random.normal(ks[0], (feat_dim, hidden_dim), jnp.float32)
    b_enc = scale * jax.random.normal(ks[1], (1, hidden_dim), jnp.float32)
    w_mu = scale * jax.random.normal(ks[2], (hidden_dim, latent_dim), jnp.float32)
    b_mu = scale * jax.random.normal(ks[3], (1, latent_dim), jnp.float32)
    w_proj = scale * jax.random.normal(ks[4], (n_idx, latent_dim), jnp.float32)
    b_proj = scale * jax.random.normal(ks[5], (1, latent_dim), jnp.float32)
    w_dec = scale * jax.random.normal(ks[6], (latent_dim, out_dim), jnp.float32)
    b_dec = scale * jax.random.normal(ks[7], (1, out_dim), jnp.float32)
    return (w_enc, b_enc, w_mu, b_mu, w_proj, b_proj, w_dec, b_dec)


def reference_forward(X, adj, indices, params):
    """Pure-JAX reference (same math, unpadded, explicit gather) for correctness check."""
    N = X.shape[0]
    a = jnp.where(jnp.eye(N, dtype=bool), 1.0, (adj != 0).astype(jnp.float32))
    deg_r = jnp.sum(a, axis=1, keepdims=True)
    deg_c = jnp.sum(a, axis=0, keepdims=True)
    a_hat = (a * jax.lax.rsqrt(jnp.maximum(deg_r, 1e-12))
               * jax.lax.rsqrt(jnp.maximum(deg_c, 1e-12)))
    (w_enc, b_enc, w_mu, b_mu, w_proj, b_proj, w_dec, b_dec) = params
    pos_z = jnp.maximum(a_hat @ (X @ w_enc) + b_enc, 0.0)
    z = pos_z @ w_mu + b_mu
    r = jnp.take(X, indices, axis=1) @ w_proj + b_proj
    return (z + r) @ w_dec + b_dec


if __name__ == "__main__":
    key = jax.random.PRNGKey(0)
    k_x, k_adj, k_p = jax.random.split(key, 3)

    N, F = 16, 32            # nodes, features
    hidden, latent = 32, 16  # encoder hidden dim, latent dim
    out_dim = 32             # decoder output dim
    n_idx = 8                # number of gene indices

    X = jax.random.normal(k_x, (N, F), jnp.float32)
    adj = (jax.random.uniform(k_adj, (N, N)) > 0.7).astype(jnp.float32)
    adj = jnp.maximum(adj, adj.T)                            # symmetric adjacency
    indices = jnp.arange(0, 2 * n_idx, 2, dtype=jnp.int32)   # deterministic indices

    params = init_params(k_p, F, hidden, latent, n_idx, out_dim)
    kparams, o_dim = prepare_params(params, indices, F)      # one-time prep

    out = protein_imputer_forward(X, adj, kparams, o_dim)
    out = jax.block_until_ready(out)

    ref = reference_forward(X, adj, indices, params)
    assert out.shape == (N, out_dim)
    assert jnp.allclose(out, ref, atol=1e-4, rtol=1e-4)

    print("KERNEL_OK")
</pallas_src>

<mosaic_0001>
module attributes {stable_mosaic.version = 11 : i64} {
  func.func @_imputer_kernel(%arg0: memref<16x16xf32, #tpu.memory_space<vmem>>, %arg1: memref<16x32xf32, #tpu.memory_space<vmem>>, %arg2: memref<32x128xf32, #tpu.memory_space<vmem>>, %arg3: memref<1x128xf32, #tpu.memory_space<vmem>>, %arg4: memref<128x128xf32, #tpu.memory_space<vmem>>, %arg5: memref<32x128xf32, #tpu.memory_space<vmem>>, %arg6: memref<1x128xf32, #tpu.memory_space<vmem>>, %arg7: memref<128x128xf32, #tpu.memory_space<vmem>>, %arg8: memref<1x128xf32, #tpu.memory_space<vmem>>, %arg9: memref<16x128xf32, #tpu.memory_space<vmem>>) attributes {dimension_semantics = [], scalar_prefetch = 0 : i64, scratch_operands = 0 : i64, tpu.core_type = #tpu.core_type<tc>} {
    %c0 = arith.constant 0 : index
    %c0_0 = arith.constant 0 : index
    %0 = vector.load %arg0[%c0, %c0_0] : memref<16x16xf32, #tpu.memory_space<vmem>>, vector<16x16xf32>
    %1 = tpu.iota {dimensions = array<i32: 0>} : vector<16x16xi32>
    %2 = tpu.iota {dimensions = array<i32: 1>} : vector<16x16xi32>
    %3 = arith.cmpi eq, %1, %2 : vector<16x16xi32>
    %cst = arith.constant 0.000000e+00 : f32
    %4 = vector.broadcast %cst : f32 to vector<16x16xf32>
    %5 = arith.cmpf one, %0, %4 : vector<16x16xf32>
    %6 = arith.extui %5 : vector<16x16xi1> to vector<16x16xi32>
    %7 = arith.sitofp %6 : vector<16x16xi32> to vector<16x16xf32>
    %cst_1 = arith.constant 1.000000e+00 : f32
    %8 = vector.broadcast %cst_1 : f32 to vector<16x16xf32>
    %9 = arith.select %3, %8, %7 : vector<16x16xi1>, vector<16x16xf32>
    %cst_2 = arith.constant dense<0.000000e+00> : vector<16xf32>
    %10 = vector.multi_reduction <add>, %9, %cst_2 [1] : vector<16x16xf32> to vector<16xf32>
    %11 = vector.shape_cast %10 : vector<16xf32> to vector<16x1xf32>
    %cst_3 = arith.constant dense<0.000000e+00> : vector<16xf32>
    %12 = vector.multi_reduction <add>, %9, %cst_3 [0] : vector<16x16xf32> to vector<16xf32>
    %13 = vector.shape_cast %12 : vector<16xf32> to vector<1x16xf32>
    %cst_4 = arith.constant 9.99999996E-13 : f32
    %14 = vector.broadcast %cst_4 : f32 to vector<16x1xf32>
    %15 = arith.maximumf %11, %14 : vector<16x1xf32>
    %16 = math.rsqrt %15 : vector<16x1xf32>
    %cst_5 = arith.constant 9.99999996E-13 : f32
    %17 = vector.broadcast %cst_5 : f32 to vector<1x16xf32>
    %18 = arith.maximumf %13, %17 : vector<1x16xf32>
    %19 = math.rsqrt %18 : vector<1x16xf32>
    %20 = vector.broadcast %16 : vector<16x1xf32> to vector<16x16xf32>
    %21 = arith.mulf %9, %20 : vector<16x16xf32>
    %22 = vector.broadcast %19 : vector<1x16xf32> to vector<16x16xf32>
    %23 = arith.mulf %21, %22 : vector<16x16xf32>
    %c0_6 = arith.constant 0 : index
    %c0_7 = arith.constant 0 : index
    %24 = vector.load %arg1[%c0_6, %c0_7] : memref<16x32xf32, #tpu.memory_space<vmem>>, vector<16x32xf32>
    %c0_8 = arith.constant 0 : index
    %c0_9 = arith.constant 0 : index
    %25 = vector.load %arg2[%c0_8, %c0_9] : memref<32x128xf32, #tpu.memory_space<vmem>>, vector<32x128xf32>
    %cst_10 = arith.constant dense<0.000000e+00> : vector<16x128xf32>
    %26 = tpu.matmul %24, %25, %cst_10 {dimension_numbers = #tpu.dot_dimension_numbers<[1], [0], [0], [1], [0, 0, 1, 1], [], []>} : vector<16x32xf32>, vector<32x128xf32>, vector<16x128xf32> -> vector<16x128xf32>
    %cst_11 = arith.constant dense<0.000000e+00> : vector<16x128xf32>
    %27 = tpu.matmul %23, %26, %cst_11 {dimension_numbers = #tpu.dot_dimension_numbers<[1], [0], [0], [1], [0, 0, 1, 1], [], []>} : vector<16x16xf32>, vector<16x128xf32>, vector<16x128xf32> -> vector<16x128xf32>
    %c0_12 = arith.constant 0 : index
    %c0_13 = arith.constant 0 : index
    %28 = vector.load %arg3[%c0_12, %c0_13] : memref<1x128xf32, #tpu.memory_space<vmem>>, vector<1x128xf32>
    %29 = vector.broadcast %28 : vector<1x128xf32> to vector<16x128xf32>
    %30 = arith.addf %27, %29 : vector<16x128xf32>
    %cst_14 = arith.constant 0.000000e+00 : f32
    %31 = vector.broadcast %cst_14 : f32 to vector<16x128xf32>
    %32 = arith.maximumf %30, %31 : vector<16x128xf32>
    %c0_15 = arith.constant 0 : index
    %c0_16 = arith.constant 0 : index
    %33 = vector.load %arg4[%c0_15, %c0_16] : memref<128x128xf32, #tpu.memory_space<vmem>>, vector<128x128xf32>
    %cst_17 = arith.constant dense<0.000000e+00> : vector<16x128xf32>
    %34 = tpu.matmul %32, %33, %cst_17 {dimension_numbers = #tpu.dot_dimension_numbers<[1], [0], [0], [1], [0, 0, 1, 1], [], []>} : vector<16x128xf32>, vector<128x128xf32>, vector<16x128xf32> -> vector<16x128xf32>
    %c0_18 = arith.constant 0 : index
    %c0_19 = arith.constant 0 : index
    %35 = vector.load %arg5[%c0_18, %c0_19] : memref<32x128xf32, #tpu.memory_space<vmem>>, vector<32x128xf32>
    %cst_20 = arith.constant dense<0.000000e+00> : vector<16x128xf32>
    %36 = tpu.matmul %24, %35, %cst_20 {dimension_numbers = #tpu.dot_dimension_numbers<[1], [0], [0], [1], [0, 0, 1, 1], [], []>} : vector<16x32xf32>, vector<32x128xf32>, vector<16x128xf32> -> vector<16x128xf32>
    %37 = arith.addf %34, %36 : vector<16x128xf32>
    %c0_21 = arith.constant 0 : index
    %c0_22 = arith.constant 0 : index
    %38 = vector.load %arg6[%c0_21, %c0_22] : memref<1x128xf32, #tpu.memory_space<vmem>>, vector<1x128xf32>
    %39 = vector.broadcast %38 : vector<1x128xf32> to vector<16x128xf32>
    %40 = arith.addf %37, %39 : vector<16x128xf32>
    %c0_23 = arith.constant 0 : index
    %c0_24 = arith.constant 0 : index
    %41 = vector.load %arg7[%c0_23, %c0_24] : memref<128x128xf32, #tpu.memory_space<vmem>>, vector<128x128xf32>
    %cst_25 = arith.constant dense<0.000000e+00> : vector<16x128xf32>
    %42 = tpu.matmul %40, %41, %cst_25 {dimension_numbers = #tpu.dot_dimension_numbers<[1], [0], [0], [1], [0, 0, 1, 1], [], []>} : vector<16x128xf32>, vector<128x128xf32>, vector<16x128xf32> -> vector<16x128xf32>
    %c0_26 = arith.constant 0 : index
    %c0_27 = arith.constant 0 : index
    %43 = vector.load %arg8[%c0_26, %c0_27] : memref<1x128xf32, #tpu.memory_space<vmem>>, vector<1x128xf32>
    %44 = vector.broadcast %43 : vector<1x128xf32> to vector<16x128xf32>
    %45 = arith.addf %42, %44 : vector<16x128xf32>
    %c0_28 = arith.constant 0 : index
    %c0_29 = arith.constant 0 : index
    %46 = vector.load %arg9[%c0_28, %c0_29] : memref<16x128xf32, #tpu.memory_space<vmem>>, vector<16x128xf32>
    tpu.vector_store %arg9[%c0_28, %c0_29], %45 {strides = array<i32>} : memref<16x128xf32, #tpu.memory_space<vmem>>, vector<16x128xf32>,
    return
  }
}

</mosaic_0001>

<bundles_post_ra>
// kernel: tpu_custom_call.1
= control target key start
LH: loop header
LB: loop body
LE: loop exit
PB: predicated region body
PF: predicated region fallthrough
CT: control target
= control target key end

     0   :  { %14 = vsyncpa [#allocation3], 0  ;;  %s745_s0 = inlined_call_operand.hbm [shape: f32[16,16], index: 0, kind: input, shape index: {}]   ;;  %s746_s1 = inlined_call_operand.hbm [shape: f32[16,32], index: 1, kind: input, shape index: {}]   ;;  %s747_s2 = inlined_call_operand.hbm [shape: f32[32,128], index: 2, kind: input, shape index: {}]   ;;  %s748_s3 = inlined_call_operand.vmem [shape: f32[1,128], index: 3, kind: input, shape index: {}]   ;;  %s749_s4 = inlined_call_operand.hbm [shape: f32[128,128], index: 4, kind: input, shape index: {}]   ;;  %s750_s5 = inlined_call_operand.hbm [shape: f32[32,128], index: 5, kind: input, shape index: {}]   ;;  %s751_s6 = inlined_call_operand.vmem [shape: f32[1,128], index: 6, kind: input, shape index: {}]   ;;  %s752_s7 = inlined_call_operand.hbm [shape: f32[128,128], index: 7, kind: input, shape index: {}]   ;;  %s753_s8 = inlined_call_operand.vmem [shape: f32[1,128], index: 8, kind: input, shape index: {}]   ;;  %s754_s9 = inlined_call_operand.hbm [shape: f32[16,128], index: 9, kind: output, shape index: {}]  }
   0x1   :  { %15 = vsyncpa [#allocation6], 0 }
   0x2   :  { %16 = vsyncpa [#allocation9], 0 }
   0x3   :  { %17 = vsyncpa [#allocation12], 0 }
   0x4   :  { %18 = vsyncpa [#allocation4], 0  ;;  %s36_s11 = sshll.u32 %s746_s1, 4  ;;  %s610_s12 = smov [#allocation5]   ;;  %s37_s11 = int_to_ptr.hbm [resolvable:$true] %s36_s11 }
   0x5   :  { %s38_s13 = sshll.u32 %s610_s12, 4  ;;  %s64_s16 = sshll.u32 %s749_s4, 4  ;;  %s39_s13 = int_to_ptr.vmem [resolvable:$true] %s38_s13  ;;  %s65_s16 = int_to_ptr.hbm [resolvable:$true] %s64_s16 }
   0x6   :  { %s611_s17 = smov 128   ;;  %s612_s18 = smov 8  }
   0x7   :  { %44 = dma.hbm_to_vmem [thread:$0]  %s37_s11, 256, %s39_s13, [#allocation6], %s611_s17, %s611_s17, %s612_s18  }
   0x8   :  { %s613_s19 = smov [#allocation8]   ;;  %s23_s1 = sshll.u32 %s745_s0, 4  ;;  %s24_s1 = int_to_ptr.hbm [resolvable:$true] %s23_s1 }
   0x9   :  { %s66_s20 = sshll.u32 %s613_s19, 4  ;;  %s49_s24 = sshll.u32 %s747_s2, 4  ;;  %s67_s20 = int_to_ptr.vmem [resolvable:$true] %s66_s20  ;;  %s50_s24 = int_to_ptr.hbm [resolvable:$true] %s49_s24 }
   0xa   :  { %72 = dma.hbm_to_vmem [thread:$0]  %s65_s16, 2048, %s67_s20, [#allocation9], %s611_s17, %s611_s17, %s612_s18  }
   0xb   :  { %s614_s25 = smov [#allocation2]   ;;  %s615_s27 = smov [#allocation7]  }
   0xc   :  { %s25_s26 = sshll.u32 %s614_s25, 4  ;;  %s51_s0 = sshll.u32 %s615_s27, 4  ;;  %s26_s26 = int_to_ptr.vmem [resolvable:$true] %s25_s26  ;;  %s52_s0 = int_to_ptr.vmem [resolvable:$true] %s51_s0 }
   0xd   :  { %31 = dma.hbm_to_vmem [thread:$0]  %s24_s1, 256, %s26_s26, [#allocation3], %s611_s17, %s611_s17, %s612_s18  }
   0xe   :  { %s77_s30 = sshll.u32 %s750_s5, 4  ;;  %s92_s11 = sshll.u32 %s752_s7, 4  ;;  %s78_s30 = int_to_ptr.hbm [resolvable:$true] %s77_s30  ;;  %s93_s11 = int_to_ptr.hbm [resolvable:$true] %s92_s11 }
   0xf   :  { %57 = dma.hbm_to_vmem [thread:$0]  %s50_s24, 512, %s52_s0, [#allocation6], %s611_s17, %s611_s17, %s612_s18  }
  0x10   :  { %s616_s12 = smov [#allocation10]   ;;  %s617_s14 = smov [#allocation11]  }
  0x11   :  { %s79_s13 = sshll.u32 %s616_s12, 4  ;;  %s94_s5 = sshll.u32 %s617_s14, 4  ;;  %s80_s13 = int_to_ptr.vmem [resolvable:$true] %s79_s13  ;;  %s95_s5 = int_to_ptr.vmem [resolvable:$true] %s94_s5 }
  0x12   :  { %85 = dma.hbm_to_vmem [thread:$0]  %s78_s30, 512, %s80_s13, [#allocation9], %s611_s17, %s611_s17, %s612_s18  }
  0x13   :  { %100 = dma.hbm_to_vmem [thread:$0]  %s93_s11, 2048, %s95_s5, [#allocation12], %s611_s17, %s611_s17, %s612_s18  }
  0x14   :  { %600 = dma.done.wait [#allocation3], 256  }
  0x15   :  { %601 = vsyncadd [#allocation3], 4294967040 }
  0x16   :  { %602 = dma.done.wait [#allocation6], 768  }
  0x17   :  { %603 = vsyncadd [#allocation6], 4294966528 }
  0x18   :  { %604 = dma.done.wait [#allocation9], 2560  }
  0x19   :  { %605 = vsyncadd [#allocation9], 4294964736 }
  0x1a   :  { %606 = dma.done.wait [#allocation12], 2048  }
  0x1b   :  { %607 = vsyncadd [#allocation12], 4294965248  ;;  %v129_v0 = vlaneseq  ;;  %v200_v4 = vld [vmem:[#allocation7 + $0x18] sm:$0xff]  ;;  %v199_v5 = vld [vmem:[#allocation7 + $0x10] sm:$0xff]  ;;  %vm144_vm2 = vcmask 130048   ;;  %v618_v9 = vmov 0.0  }
  0x1c   :  { %220 = vmatpush.msra.mxu0 %v200_v4  ;;  %v127_v6 = vld [vmem:[#allocation2] sm:$0xff]  ;;  %v198_v7 = vld [vmem:[#allocation7 + $0x8] sm:$0xff]  ;;  %v710_v15 = vld [vmem:[#allocation5] sm:$0xff]  ;;  %vm201_vm5 = vcmask 261120   ;;  %s619_s21 = smov [#allocation13]   ;;  %s389_s4 = sshll.u32 %s754_s9, 4  ;;  %s390_s4 = int_to_ptr.hbm [resolvable:$true] %s389_s4 }
  0x1d   :  { %v130_v1 = vshrl.u32 %v129_v0, 7  ;;  %v133_v2 = vand.u32 127, %v129_v0  ;;  %vm136_vm1 = vcmp.ne.f32.partialorder %v127_v6, 0.0  ;;  %v128_v8 = vld [vmem:[#allocation2 + $0x8] sm:$0xff]  ;;  %v197_v12 = vld [vmem:[#allocation7] sm:$0xff]  ;;  %v718_v19 = vld [vmem:[#allocation5 + $0x8] sm:$0xff] }
  0x1e   :  { %221 = vmatpush.msra.mxu0 %v199_v5  ;;  %v405_v10 = vsel %vm136_vm1, 1.0, %v618_v9  ;;  %vm137_vm4 = vcmp.ne.f32.partialorder %v128_v8, 0.0  ;;  %v281_v31 = vld [vmem:[#allocation8 + $0x78] sm:$0xff]  ;;  %v280_v32 = vld [vmem:[#allocation8 + $0x70] sm:$0xff]  ;;  %v279_v33 = vld [vmem:[#allocation8 + $0x68] sm:$0xff]  ;;  %s387_s22 = sshll.u32 %s619_s21, 4  ;;  %s388_s22 = int_to_ptr.vmem [resolvable:$true] %s387_s22 }
  0x1f   :  { %v131_v3 = vadd.s32 8, %v130_v1  ;;  %vm134_vm0 = vcmp.eq.s32.totalorder %v130_v1, %v133_v2  ;;  %v406_v13 = vsel %vm137_vm4, 1.0, %v618_v9  ;;  %309 = vmatpush.msra.mxu3 %v281_v31  ;;  %v278_v35 = vld [vmem:[#allocation8 + $0x60] sm:$0xff]  ;;  %v285_v36 = vld [vmem:[#allocation10 + $0x18] sm:$0xff]  ;;  %v276_v42 = vld [vmem:[#allocation8 + $0x50] sm:$0xff] }
  0x20   :  { %v706_v11 = vsel %vm134_vm0, 1.0, %v405_v10  ;;  %222 = vmatpush.msra.mxu0 %v198_v7  ;;  %298 = vmatpush.msra.mxu2 %v285_v36  ;;  %v277_v37 = vld [vmem:[#allocation8 + $0x58] sm:$0xff]  ;;  %v275_v44 = vld [vmem:[#allocation8 + $0x48] sm:$0xff]  ;;  %v274_v48 = vld [vmem:[#allocation8 + $0x40] sm:$0xff] }
  0x21   :  { %vm135_vm3 = vcmp.eq.s32.totalorder %v131_v3, %v133_v2  ;;  %v145_v14 = vsel %vm144_vm2, %v706_v11, 0.0  ;;  %310 = vmatpush.msra.mxu3 %v280_v32  ;;  %v273_v50 = vld [vmem:[#allocation8 + $0x38] sm:$0xff]  ;;  %v272_v54 = vld [vmem:[#allocation8 + $0x30] sm:$0xff]  ;;  %v271_v57 = vld [vmem:[#allocation8 + $0x28] sm:$0xff] }
  0x22   :  { %v712_v16 = vsel %vm135_vm3, 1.0, %v406_v13  ;;  %146 = vadd.xlane.f32.xlu0 %v145_v14  ;;  %223 = vmatpush.msra.mxu0 %v197_v12  ;;  %v270_v63 = vld [vmem:[#allocation8 + $0x20] sm:$0xff]  ;;  %v269_v2 = vld [vmem:[#allocation8 + $0x18] sm:$0xff]  ;;  %v284_v8 = vld [vmem:[#allocation10 + $0x10] sm:$0xff] }
  0x23   :  { %v148_v17 = vsel %vm144_vm2, %v712_v16, 0.0  ;;  %407 = vmatmul.msk.f32.vlgmr.msra.gmra.mxu0 %vm201_vm5, %v710_v15  ;;  %311 = vmatpush.msra.mxu3 %v279_v33  ;;  %v268_v9 = vld [vmem:[#allocation8 + $0x10] sm:$0xff]  ;;  %v283_v10 = vld [vmem:[#allocation10 + $0x8] sm:$0xff]  ;;  %v282_v12 = vld [vmem:[#allocation10] sm:$0xff] }
  0x24   :  { %v151_v18 = vadd.f32 %v148_v17, %v145_v14  ;;  %299 = vmatpush.msra.mxu2 %v284_v8  ;;  %v266_v13 = vld [vmem:[#allocation8] sm:$0xff]  ;;  %v353_v14 = vld [vmem:[#allocation11 + $0x78] sm:$0xff] }
  0x25   :  { %312 = vmatpush.msra.mxu3 %v278_v35  ;;  %358 = vmatpush.msra.mxu1 %v353_v14  ;;  %v339_v35 = vld [vmem:[#allocation11 + $0x8] sm:$0xff]  ;;  %v338_v36 = vld [vmem:[#allocation11] sm:$0xff] }
  0x26   :  { %v152_v20 = vrot.slane %v151_v18, 4  ;;  %300 = vmatpush.msra.mxu2 %v283_v10 }
  0x27   :  { %313 = vmatpush.msra.mxu3 %v277_v37 }
  0x28   :  { %v153_v21 = vadd.f32 %v152_v20, %v151_v18  ;;  %301 = vmatpush.msra.mxu2 %v282_v12  ;;  %v350_v18 = vld [vmem:[#allocation11 + $0x60] sm:$0xff]  ;;  %v349_v20 = vld [vmem:[#allocation11 + $0x58] sm:$0xff] }
  0x29   :  { %314 = vmatpush.msra.mxu3 %v276_v42  ;;  %411 = vmatmul.msk.f32.vlgmr.msra.gmra.mxu2 %vm201_vm5, %v710_v15  ;;  %v423_v15 = vld [vmem:[%s748_s3] ss:$0 sm:$0xff] }
  0x2a   :  { %149 = vadd.xlane.f32.xlu0 %v148_v17  ;;  %v154_v22 = vrot.slane %v153_v21, 2  ;;  %v351_v17 = vld [vmem:[#allocation11 + $0x68] sm:$0xff] }
  0x2b   :  { %408 = vmatmul.msk.f32.gmra.mxu0 %vm201_vm5, %v718_v19  ;;  %315 = vmatpush.msra.mxu3 %v275_v44 }
  0x2c   :  { %v155_v23 = vadd.f32 %v154_v22, %v153_v21  ;;  %v348_v21 = vld [vmem:[#allocation11 + $0x50] sm:$0xff]  ;;  %v347_v22 = vld [vmem:[#allocation11 + $0x48] sm:$0xff] }
  0x2d   :  { %316 = vmatpush.msra.mxu3 %v274_v48 }
  0x2e   :  { %v156_v24 = vrot.slane %v155_v23, 1 }
  0x2f   :  { %317 = vmatpush.msra.mxu3 %v273_v50 }
  0x30   :  { %v157_v25 = vadd.f32 %v156_v24, %v155_v23  ;;  %v346_v23 = vld [vmem:[#allocation11 + $0x40] sm:$0xff]  ;;  %v345_v24 = vld [vmem:[#allocation11 + $0x38] sm:$0xff] }
  0x31   :  { %318 = vmatpush.msra.mxu3 %v272_v54  ;;  %412 = vmatmul.msk.f32.gmra.mxu2 %vm201_vm5, %v718_v19  ;;  %v344_v19 = vld [vmem:[#allocation11 + $0x30] sm:$0xff] }
  0x32   :  { %v180_v26 = vmax.f32 %v157_v25, 1e-12  ;;  %v343_v25 = vld [vmem:[#allocation11 + $0x28] sm:$0xff] }
  0x33   :  { %319 = vmatpush.msra.mxu3 %v271_v57 }
  0x34   :  { %426 = vrsqrt.f32 %v180_v26  ;;  %vm187_vm6 = vweird.f32 %v180_v26 }
  0x35   :  { %320 = vmatpush.msra.mxu3 %v270_v63 }
  0x37   :  { %321 = vmatpush.msra.mxu3 %v269_v2 }
  0x39   :  { %322 = vmatpush.msra.mxu3 %v268_v9 }
  0x3a   :  { %v427_v27 = vpop.eup %426 }
  0x3b   :  { %v182_v28 = vmul.f32 %v427_v27, %v180_v26  ;;  %vm188_vm7 = vweird.f32 %v427_v27 }
  0x3c   :  { %vm189_vm9 = vmor %vm187_vm6, %vm188_vm7 }
  0x3d   :  { %v183_v34 = vmul.f32 %v427_v27, %v182_v28  ;;  %v342_v28 = vld [vmem:[#allocation11 + $0x20] sm:$0xff] }
  0x3f   :  { %v184_v38 = vmul.f32 0.5, %v183_v34  ;;  %v340_v34 = vld [vmem:[#allocation11 + $0x10] sm:$0xff] }
  0x41   :  { %v185_v47 = vsub.f32 1.5, %v184_v38  ;;  %v424_v38 = vld [vmem:[%s751_s6] ss:$0 sm:$0xff] }
  0x43   :  { %v186_v52 = vmul.f32 %v427_v27, %v185_v47 }
  0x45   :  { %v190_v61 = vsel %vm189_vm9, %v427_v27, %v186_v52 }
  0x95   :  { %v147_v29 = vpop.xlane.xlu0 %146 }
  0x96   :  { %v158_v30 = vmax.f32 %v147_v29, 1e-12 }
  0x98   :  { %428 = vrsqrt.f32 %v158_v30  ;;  %vm166_vm10 = vweird.f32 %v158_v30 }
  0x9d   :  { %v150_v39 = vpop.xlane.xlu0 %149 }
  0x9e   :  { %v429_v40 = vpop.eup %428  ;;  %v159_v41 = vmax.f32 %v150_v39, 1e-12 }
  0x9f   :  { %v161_v43 = vmul.f32 %v429_v40, %v158_v30  ;;  %vm167_vm8 = vweird.f32 %v429_v40  ;;  %v341_v30 = vld [vmem:[#allocation11 + $0x18] sm:$0xff] }
  0xa0   :  { %430 = vrsqrt.f32 %v159_v41  ;;  %v225_v46 = vpop.f32.mrf.mxu0  ;;  %vm168_vm11 = vmor %vm166_vm10, %vm167_vm8  ;;  %vm176_vm13 = vweird.f32 %v159_v41 }
  0xa1   :  { %v162_v45 = vmul.f32 %v429_v40, %v161_v43 }
  0xa3   :  { %v163_v49 = vmul.f32 0.5, %v162_v45 }
  0xa5   :  { %v164_v51 = vsub.f32 1.5, %v163_v49 }
  0xa6   :  { %v431_v53 = vpop.eup %430 }
  0xa7   :  { %v165_v55 = vmul.f32 %v429_v40, %v164_v51  ;;  %v171_v56 = vmul.f32 %v431_v53, %v159_v41  ;;  %vm177_vm12 = vweird.f32 %v431_v53 }
  0xa8   :  { %v228_v60 = vpop.f32.mrf.mxu0  ;;  %vm178_vm14 = vmor %vm176_vm13, %vm177_vm12 }
  0xa9   :  { %v169_v58 = vsel %vm168_vm11, %v429_v40, %v165_v55  ;;  %v172_v59 = vmul.f32 %v431_v53, %v171_v56  ;;  %255 = vmatpush.msrb.mxu0 %v228_v60 }
  0xaa   :  { %v191_v62 = vmul.f32 %v169_v58, %v706_v11  ;;  %v267_v11 = vld [vmem:[#allocation8 + $0x8] sm:$0xff] }
  0xab   :  { %v173_v0 = vmul.f32 0.5, %v172_v59  ;;  %256 = vmatpush.msrb.mxu0 %v225_v46  ;;  %323 = vmatpush.msra.mxu3 %v267_v11  ;;  %v425_v46 = vld [vmem:[%s753_s8] ss:$0 sm:$0xff] }
  0xac   :  { %v193_v1 = vmul.f32 %v191_v62, %v190_v61  ;;  %v303_v37 = vpop.f32.mrf.mxu2 }
  0xad   :  { %v174_v3 = vsub.f32 1.5, %v173_v0  ;;  %324 = vmatpush.msra.mxu3 %v266_v13 }
  0xae   :  { %409 = vmatmul.msk.f32.vlgmr.msrb.gmra.mxu0 %vm144_vm2, %v193_v1 }
  0xaf   :  { %v175_v4 = vmul.f32 %v431_v53, %v174_v3 }
  0xb1   :  { %v179_v5 = vsel %vm178_vm14, %v431_v53, %v175_v4 }
  0xb2   :  { %v192_v6 = vmul.f32 %v179_v5, %v712_v16  ;;  %v352_v16 = vld [vmem:[#allocation11 + $0x70] sm:$0xff] }
  0xb3   :  { %359 = vmatpush.msra.mxu1 %v352_v16 }
  0xb4   :  { %v194_v7 = vmul.f32 %v192_v6, %v190_v61  ;;  %v306_v42 = vpop.f32.mrf.mxu2 }
  0xb5   :  { %360 = vmatpush.msra.mxu1 %v351_v17 }
  0xb6   :  { %410 = vmatmul.msk.f32.gmra.mxu0 %vm144_vm2, %v194_v7 }
  0xb7   :  { %361 = vmatpush.msra.mxu1 %v350_v18 }
  0xb9   :  { %362 = vmatpush.msra.mxu1 %v349_v20 }
  0xbb   :  { %363 = vmatpush.msra.mxu1 %v348_v21 }
  0xbd   :  { %364 = vmatpush.msra.mxu1 %v347_v22 }
  0xbf   :  { %365 = vmatpush.msra.mxu1 %v346_v23 }
  0xc1   :  { %366 = vmatpush.msra.mxu1 %v345_v24 }
  0xc3   :  { %367 = vmatpush.msra.mxu1 %v344_v19 }
  0xc5   :  { %368 = vmatpush.msra.mxu1 %v343_v25 }
  0xc7   :  { %369 = vmatpush.msra.mxu1 %v342_v28 }
  0xc9   :  { %370 = vmatpush.msra.mxu1 %v341_v30 }
  0xcb   :  { %371 = vmatpush.msra.mxu1 %v340_v34 }
  0xcd   :  { %372 = vmatpush.msra.mxu1 %v339_v35 }
  0xcf   :  { %373 = vmatpush.msra.mxu1 %v338_v36 }
 0x12b   :  { %v258_v26 = vpop.f32.mrf.mxu0 }
 0x12c   :  { %v259_v27 = vadd.f32 %v423_v15, %v258_v26 }
 0x12e   :  { %v264_v29 = vmax.f32 %v259_v27, 0.0 }
 0x130   :  { %325 = vmatmul.f32.vlgmr.msra.gmra.mxu3 %v264_v29 }
 0x133   :  { %v261_v31 = vpop.f32.mrf.mxu0 }
 0x134   :  { %v262_v32 = vadd.f32 %v423_v15, %v261_v31 }
 0x136   :  { %v265_v33 = vmax.f32 %v262_v32, 0.0 }
 0x138   :  { %328 = vmatmul.f32.gmra.mxu3 %v265_v33 }
 0x1b3   :  { %v326_v39 = vpop.f32.mrf.mxu3 }
 0x1b4   :  { %v327_v40 = vadd.f32 %v326_v39, %v303_v37 }
 0x1b6   :  { %v336_v41 = vadd.f32 %v424_v38, %v327_v40 }
 0x1b8   :  { %374 = vmatmul.f32.vlgmr.msra.gmra.mxu1 %v336_v41 }
 0x1bb   :  { %v329_v43 = vpop.f32.mrf.mxu3 }
 0x1bc   :  { %v330_v44 = vadd.f32 %v329_v43, %v306_v42 }
 0x1be   :  { %v337_v45 = vadd.f32 %v424_v38, %v330_v44 }
 0x1c0   :  { %377 = vmatmul.f32.gmra.mxu1 %v337_v45 }
 0x235   :  { %v375_v47 = vpop.f32.mrf.mxu1 }
 0x236   :  { %v376_v48 = vadd.f32 %v425_v46, %v375_v47 }
 0x238   :  { %381 = vst [vmem:[#allocation13] sm:$0xff] %v376_v48 }
 0x23d   :  { %v378_v49 = vpop.f32.mrf.mxu1 }
 0x23e   :  { %v379_v50 = vadd.f32 %v425_v46, %v378_v49 }
 0x240   :  { %382 = vst [vmem:[#allocation13 + $0x8] sm:$0xff] %v379_v50 }
 0x241   :  { %395 = dma.vmem_to_hbm [thread:$0]  %s388_s22, 256, %s390_s4, [#allocation4], %s611_s17, %s611_s17, %s612_s18  }
 0x242   :  { %608 = dma.done.wait [#allocation4], 256  }
 0x243   :  { %609 = vsyncadd [#allocation4], 4294967040 }
 0x244   :  { %400 = vsyncpa [#allocation3], 1 }
 0x245   :  { %401 = vsyncpa [#allocation6], 1 }
 0x246   :  { %402 = vsyncpa [#allocation9], 1 }
 0x247   :  { %403 = vsyncpa [#allocation12], 1 }
 0x248   :  { %404 = vsyncpa [#allocation4], 1 }

</bundles_post_ra>
